<compile_context>
chip_gen: v6e
topology: v6e:2x2x1
jax: 0.10.0
libtpu: 0.0.40
codegen_flags: <defaults>
</compile_context>

<pallas_src>
import functools

import jax
import jax.numpy as jnp
from jax import lax
from jax.experimental import pallas as pl
from jax.experimental.pallas import tpu as pltpu


def _round_up(x, m):
    return (x + m - 1) // m * m


def cluster_memory_kernel(x_ref, feat_ref, tgtf_ref, out_ref, loss_ref,
                          xn_ref, m_ref, l_ref, t_ref,
                          *, temp, n_valid, b_valid, block_b, block_n, n_has_pad):
    """Fused: L2-normalize rows -> tiled matmul with bank.T -> /temp -> online-softmax CE."""
    i = pl.program_id(0)          # batch tile (parallel)
    j = pl.program_id(1)          # memory-bank tile (reduction / arbitrary)
    nn = pl.num_programs(1)

    # --- per-batch-tile init: normalize once, target logit once, zero softmax state ----
    @pl.when(j == 0)
    def _init():
        x = x_ref[...].astype(jnp.float32)                          # [TB, D]
        sq = jnp.sum(x * x, axis=1, keepdims=True)                  # [TB, 1]
        # 1/max(||x||, 1e-12) == rsqrt(max(||x||^2, 1e-24)); fold 1/temp in here
        inv = lax.rsqrt(jnp.maximum(sq, 1e-24)) * (1.0 / temp)
        xn = (x * inv).astype(xn_ref.dtype)
        xn_ref[...] = xn
        # Target logit = <x_norm/temp, features[target]> computed once per batch tile
        # from the pre-gathered target rows (replaces the per-tile one-hot extraction).
        t_ref[...] = jnp.sum(xn.astype(jnp.float32) * tgtf_ref[...].astype(jnp.float32),
                             axis=1, keepdims=True)
        m_ref[...] = jnp.full_like(m_ref, -jnp.inf)
        l_ref[...] = jnp.zeros_like(l_ref)

    # --- logits tile: native-dtype operands (bf16 MXU path), f32 accumulation ----------
    logits = lax.dot_general(
        xn_ref[...], feat_ref[...],
        dimension_numbers=(((1,), (1,)), ((), ())),
        preferred_element_type=jnp.float32,
    )                                                                # [TB, TN]
    out_ref[...] = logits.astype(out_ref.dtype)

    # --- online softmax update ----------------------------------------------------------
    def _online_update(lg):
        m_prev = m_ref[...]
        m_new = jnp.maximum(m_prev, jnp.max(lg, axis=1, keepdims=True))
        alpha = jnp.exp(m_prev - m_new)
        p = jnp.exp(lg - m_new)
        l_ref[...] = alpha * l_ref[...] + jnp.sum(p, axis=1, keepdims=True)
        m_ref[...] = m_new

    if n_has_pad:
        # Only the last bank tile can contain padded columns; interior tiles take the
        # unmasked fast path. Column index is a (1, TN) iota broadcast (no full-tile
        # int32 tensor).
        @pl.when(j == nn - 1)
        def _tail():
            col = lax.broadcasted_iota(jnp.int32, (1, block_n), 1) + j * block_n
            _online_update(jnp.where(col < n_valid, logits, -jnp.inf))

        @pl.when(j < nn - 1)
        def _body():
            _online_update(logits)
    else:
        _online_update(logits)

    # --- finalize per-row loss on the last bank tile -------------------------------------
    @pl.when(j == nn - 1)
    def _final():
        lse = m_ref[...] + jnp.log(l_ref[...])                       # [TB, 1]
        per_row = lse - t_ref[...]
        row = lax.broadcasted_iota(jnp.int32, (block_b, 1), 0) + i * block_b
        # NOTE: (TB, 1) output is a masked (lane-sparse) store, but it is only B*4 bytes
        # and making it lane-dense would cost a sublane->lane relayout in the epilogue.
        loss_ref[...] = jnp.where(row < b_valid, per_row, 0.0)


def cluster_memory_forward(inputs, targets, features, temp=0.05,
                           block_n=1024, block_b=None,
                           out_dtype=None, matmul_dtype=None,
                           feature_buffers=2, vmem_budget_bytes=None):
    """Returns (loss, outputs) like ClusterMemory.forward (default path)."""
    B, D = inputs.shape
    N, D2 = features.shape
    assert D == D2
    out_dtype = jnp.dtype(out_dtype) if out_dtype is not None else jnp.dtype(inputs.dtype)
    matmul_dtype = (jnp.dtype(matmul_dtype) if matmul_dtype is not None
                    else jnp.dtype(features.dtype))
    if jnp.dtype(features.dtype) != matmul_dtype:
        # Downcasting the bank also halves its HBM read stream.
        features = features.astype(matmul_dtype)

    # Gather target feature rows once (B x D); kernel computes the target logit with a
    # single row-wise dot instead of a per-tile one-hot extraction.
    tgt_feat = jnp.take(features, targets.astype(jnp.int32), axis=0)

    # --- VMEM budget: ~70% of physical (128 MiB on v5e/v6e, 64 MiB on v7x) --------------
    if vmem_budget_bytes is None:
        try:
            phys = int(pltpu.get_tpu_info().vmem_capacity_bytes)
        except Exception:
            phys = 128 * 1024 * 1024
        vmem_budget_bytes = int(0.70 * phys)

    in_b = jnp.dtype(inputs.dtype).itemsize
    mm_b = matmul_dtype.itemsize
    out_b = out_dtype.itemsize

    def footprint(tb, tn):
        return (2 * tb * D * in_b                          # inputs block (double-buffered)
                + max(2, feature_buffers) * tn * D * mm_b  # streamed bank tiles
                + 2 * tb * D * mm_b                        # gathered target-row block
                + 2 * tb * tn * out_b                      # logits block
                + 2 * tb * 4                               # loss block
                + tb * D * mm_b                            # xn scratch
                + 3 * tb * 4)                              # m / l / t scratch

    # N tile: lane-dense multiple of 128. B tile: whole padded batch by default so the
    # bank is streamed from HBM exactly once (bank reuse is the dominant traffic lever).
    TN = min(_round_up(N, 128), _round_up(block_n, 128))
    if block_b is None:
        TB = _round_up(B, 8)
    else:
        TB = min(_round_up(B, 8), _round_up(block_b, 8))

    budget = 0.85 * vmem_budget_bytes
    while footprint(TB, TN) > budget and TN > 256:
        TN = max(256, _round_up(TN // 2, 128))
    while footprint(TB, TN) > budget and TB > 8:
        TB = max(8, _round_up(TB // 2, 8))
    while footprint(TB, TN) > budget and TN > 128:
        TN = max(128, _round_up(TN // 2, 128))

    B_pad = _round_up(B, TB)
    N_pad = _round_up(N, TN)

    if B_pad != B:
        inputs = jnp.pad(inputs, ((0, B_pad - B), (0, 0)))
        tgt_feat = jnp.pad(tgt_feat, ((0, B_pad - B), (0, 0)))
    if N_pad != N:
        features = jnp.pad(features, ((0, N_pad - N), (0, 0)))

    nb, nn = B_pad // TB, N_pad // TN

    kernel = functools.partial(
        cluster_memory_kernel, temp=float(temp), n_valid=N, b_valid=B,
        block_b=TB, block_n=TN, n_has_pad=(N_pad != N))

    feat_spec_kwargs = {}
    if feature_buffers != 2:
        feat_spec_kwargs["pipeline_mode"] = pl.Buffered(int(feature_buffers))
    feat_spec = pl.BlockSpec((TN, D), lambda i, j: (j, 0), **feat_spec_kwargs)

    grid_spec = pltpu.PrefetchScalarGridSpec(
        num_scalar_prefetch=0,
        grid=(nb, nn),
        in_specs=[
            pl.BlockSpec((TB, D), lambda i, j: (i, 0)),      # inputs (resident across j)
            feat_spec,                                       # memory bank (streamed)
            pl.BlockSpec((TB, D), lambda i, j: (i, 0)),      # gathered target rows
        ],
        out_specs=[
            pl.BlockSpec((TB, TN), lambda i, j: (i, j)),     # logits
            pl.BlockSpec((TB, 1), lambda i, j: (i, 0)),      # per-row CE loss
        ],
        scratch_shapes=[
            pltpu.VMEM((TB, D), matmul_dtype),               # normalized+temp-scaled inputs
            pltpu.VMEM((TB, 1), jnp.float32),                # running max
            pltpu.VMEM((TB, 1), jnp.float32),                # running sum-exp
            pltpu.VMEM((TB, 1), jnp.float32),                # target logit
        ],
    )

    # Actual traffic: inputs + tgt rows once, bank re-read once per batch tile,
    # logits writeback, tiny loss vector.
    bytes_accessed = int(
        B_pad * D * in_b
        + nb * N_pad * D * mm_b
        + B_pad * D * mm_b
        + B_pad * N_pad * out_b
        + B_pad * 4)
    cost = pl.CostEstimate(flops=2 * B_pad * N_pad * D + 4 * B_pad * D,
                           transcendentals=B_pad * N_pad,
                           bytes_accessed=bytes_accessed)

    outputs_p, loss_rows = pl.pallas_call(
        kernel,
        grid_spec=grid_spec,
        out_shape=[
            jax.ShapeDtypeStruct((B_pad, N_pad), out_dtype),
            jax.ShapeDtypeStruct((B_pad, 1), jnp.float32),
        ],
        compiler_params=pltpu.CompilerParams(
            dimension_semantics=("parallel", "arbitrary"),
            vmem_limit_bytes=int(vmem_budget_bytes),
        ),
        cost_estimate=cost,
    )(inputs, features, tgt_feat)

    # reduction='mean' over real rows, then torch's isnan -> 0 guard
    loss = jnp.sum(loss_rows) / B
    loss = jnp.where(jnp.isnan(loss), jnp.zeros_like(loss), loss)
    return loss, outputs_p[:B, :N]


def _reference_forward(inputs, targets, features, temp=0.05):
    """Plain-JAX reference for correctness checking."""
    xn = inputs / jnp.maximum(
        jnp.linalg.norm(inputs, axis=1, keepdims=True), 1e-12)
    logits = (xn @ features.T) / temp
    logp = jax.nn.log_softmax(logits, axis=1)
    loss = -jnp.mean(jnp.take_along_axis(logp, targets[:, None], axis=1))
    loss = jnp.where(jnp.isnan(loss), 0.0, loss)
    return loss, logits


if __name__ == "__main__":
    # Small shapes consistent with ClusterMemory: feature dim D, bank size N, batch B.
    # B not a multiple of 8 and N not a multiple of 128 to exercise padding/masking;
    # block_n=128 to exercise the multi-tile online-softmax path.
    B, D, N = 10, 64, 200
    temp = 0.05

    key = jax.random.PRNGKey(0)
    k_x, k_f, k_t = jax.random.split(key, 3)

    inputs = jax.random.normal(k_x, (B, D), dtype=jnp.float32)
    targets = jax.random.randint(k_t, (B,), 0, N, dtype=jnp.int32)

    # ClusterMemory registers `features` as zeros(num_samples, num_features); a zero bank
    # gives all-zero logits, so initialize deterministically with L2-normalized rows
    # (as the bank looks after cluster init).
    features = jax.random.normal(k_f, (N, D), dtype=jnp.float32)
    features = features / jnp.linalg.norm(features, axis=1, keepdims=True)

    ref_loss, ref_outputs = _reference_forward(inputs, targets, features, temp=temp)

    # f32 path, multi-tile N (exercises masked last tile + unmasked interior tile).
    loss, outputs = cluster_memory_forward(inputs, targets, features,
                                           temp=temp, block_n=128)
    jax.block_until_ready((loss, outputs))
    assert outputs.shape == (B, N)
    assert jnp.allclose(outputs, ref_outputs, atol=1e-3, rtol=1e-3)
    assert jnp.allclose(loss, ref_loss, atol=1e-3, rtol=1e-3)

    # bf16 memory-bank path: native bf16 MXU, bf16 logits writeback, f32 accumulation.
    loss_bf, out_bf = cluster_memory_forward(
        inputs.astype(jnp.bfloat16), targets, features.astype(jnp.bfloat16),
        temp=temp, block_n=128)
    jax.block_until_ready((loss_bf, out_bf))
    assert jnp.allclose(out_bf.astype(jnp.float32), ref_outputs, atol=0.5, rtol=0.05)
    assert jnp.allclose(loss_bf.astype(jnp.float32), ref_loss, atol=0.5, rtol=0.05)

    # f32 inputs with bf16 MXU operands (production throughput knob), default tiles
    # (whole-batch tile, single bank pass).
    loss_mm, out_mm = cluster_memory_forward(
        inputs, targets, features, temp=temp, matmul_dtype=jnp.bfloat16)
    jax.block_until_ready((loss_mm, out_mm))
    assert jnp.allclose(out_mm, ref_outputs, atol=0.5, rtol=0.05)
    assert jnp.allclose(loss_mm, ref_loss, atol=0.5, rtol=0.05)

    print("KERNEL_OK")
</pallas_src>

<mosaic_0001>
module attributes {stable_mosaic.version = 11 : i64} {
  func.func @cluster_memory_kernel(%arg0: i32, %arg1: i32, %arg2: memref<16x64xf32, #tpu.memory_space<vmem>>, %arg3: memref<128x64xf32, #tpu.memory_space<vmem>>, %arg4: memref<16x64xf32, #tpu.memory_space<vmem>>, %arg5: memref<16x128xf32, #tpu.memory_space<vmem>>, %arg6: memref<16x1xf32, #tpu.memory_space<vmem>>, %arg7: memref<16x64xf32, #tpu.memory_space<vmem>>, %arg8: memref<16x1xf32, #tpu.memory_space<vmem>>, %arg9: memref<16x1xf32, #tpu.memory_space<vmem>>, %arg10: memref<16x1xf32, #tpu.memory_space<vmem>>) attributes {dimension_semantics = [#tpu.dimension_semantics<parallel>, #tpu.dimension_semantics<arbitrary>], iteration_bounds = array<i64: 1, 2>, scalar_prefetch = 0 : i64, scratch_operands = 4 : i64, tpu.core_type = #tpu.core_type<tc>, window_params = [{transform_indices = @transform_0, window_bounds = array<i64: 16, 64>}, {transform_indices = @transform_1, window_bounds = array<i64: 128, 64>}, {transform_indices = @transform_2, window_bounds = array<i64: 16, 64>}, {transform_indices = @transform_3, window_bounds = array<i64: 16, 128>}, {transform_indices = @transform_4, window_bounds = array<i64: 16, 1>}]} {
    %c0_i32 = arith.constant 0 : i32
    %0 = arith.cmpi eq, %arg1, %c0_i32 : i32
    %1 = arith.extui %0 : i1 to i32
    %c0_i32_0 = arith.constant 0 : i32
    %2 = arith.cmpi ne, %1, %c0_i32_0 : i32
    scf.if %2 {
      %c0_11 = arith.constant 0 : index
      %c0_12 = arith.constant 0 : index
      %16 = vector.load %arg2[%c0_11, %c0_12] : memref<16x64xf32, #tpu.memory_space<vmem>>, vector<16x64xf32>
      %17 = arith.mulf %16, %16 : vector<16x64xf32>
      %cst_13 = arith.constant dense<0.000000e+00> : vector<16xf32>
      %18 = vector.multi_reduction <add>, %17, %cst_13 [1] : vector<16x64xf32> to vector<16xf32>
      %19 = vector.shape_cast %18 : vector<16xf32> to vector<16x1xf32>
      %cst_14 = arith.constant 1.000000e-24 : f32
      %20 = vector.broadcast %cst_14 : f32 to vector<16x1xf32>
      %21 = arith.maximumf %19, %20 : vector<16x1xf32>
      %22 = math.rsqrt %21 : vector<16x1xf32>
      %cst_15 = arith.constant 2.000000e+01 : f32
      %23 = vector.broadcast %cst_15 : f32 to vector<16x1xf32>
      %24 = arith.mulf %22, %23 : vector<16x1xf32>
      %25 = vector.broadcast %24 : vector<16x1xf32> to vector<16x64xf32>
      %26 = arith.mulf %16, %25 : vector<16x64xf32>
      %c0_16 = arith.constant 0 : index
      %c0_17 = arith.constant 0 : index
      %27 = vector.load %arg7[%c0_16, %c0_17] : memref<16x64xf32, #tpu.memory_space<vmem>>, vector<16x64xf32>
      tpu.vector_store %arg7[%c0_16, %c0_17], %26 {strides = array<i32>} : memref<16x64xf32, #tpu.memory_space<vmem>>, vector<16x64xf32>,
      %c0_18 = arith.constant 0 : index
      %c0_19 = arith.constant 0 : index
      %28 = vector.load %arg4[%c0_18, %c0_19] : memref<16x64xf32, #tpu.memory_space<vmem>>, vector<16x64xf32>
      %29 = arith.mulf %26, %28 : vector<16x64xf32>
      %cst_20 = arith.constant dense<0.000000e+00> : vector<16xf32>
      %30 = vector.multi_reduction <add>, %29, %cst_20 [1] : vector<16x64xf32> to vector<16xf32>
      %31 = vector.shape_cast %30 : vector<16xf32> to vector<16x1xf32>
      %c0_21 = arith.constant 0 : index
      %c0_22 = arith.constant 0 : index
      %32 = vector.load %arg10[%c0_21, %c0_22] : memref<16x1xf32, #tpu.memory_space<vmem>>, vector<16x1xf32>
      tpu.vector_store %arg10[%c0_21, %c0_22], %31 {strides = array<i32>} : memref<16x1xf32, #tpu.memory_space<vmem>>, vector<16x1xf32>,
      %cst_23 = arith.constant 0xFF800000 : f32
      %33 = vector.broadcast %cst_23 : f32 to vector<16x1xf32>
      %c0_24 = arith.constant 0 : index
      %c0_25 = arith.constant 0 : index
      %34 = vector.load %arg8[%c0_24, %c0_25] : memref<16x1xf32, #tpu.memory_space<vmem>>, vector<16x1xf32>
      tpu.vector_store %arg8[%c0_24, %c0_25], %33 {strides = array<i32>} : memref<16x1xf32, #tpu.memory_space<vmem>>, vector<16x1xf32>,
      %cst_26 = arith.constant 0.000000e+00 : f32
      %35 = vector.broadcast %cst_26 : f32 to vector<16x1xf32>
      %c0_27 = arith.constant 0 : index
      %c0_28 = arith.constant 0 : index
      %36 = vector.load %arg9[%c0_27, %c0_28] : memref<16x1xf32, #tpu.memory_space<vmem>>, vector<16x1xf32>
      tpu.vector_store %arg9[%c0_27, %c0_28], %35 {strides = array<i32>} : memref<16x1xf32, #tpu.memory_space<vmem>>, vector<16x1xf32>,
    } else {
    }
    %c0 = arith.constant 0 : index
    %c0_1 = arith.constant 0 : index
    %3 = vector.load %arg7[%c0, %c0_1] : memref<16x64xf32, #tpu.memory_space<vmem>>, vector<16x64xf32>
    %c0_2 = arith.constant 0 : index
    %c0_3 = arith.constant 0 : index
    %4 = vector.load %arg3[%c0_2, %c0_3] : memref<128x64xf32, #tpu.memory_space<vmem>>, vector<128x64xf32>
    %cst = arith.constant dense<0.000000e+00> : vector<16x128xf32>
    %5 = tpu.matmul %3, %4, %cst {dimension_numbers = #tpu.dot_dimension_numbers<[1], [1], [0], [0], [0, 0, 1, 0], [], []>} : vector<16x64xf32>, vector<128x64xf32>, vector<16x128xf32> -> vector<16x128xf32>
    %c0_4 = arith.constant 0 : index
    %c0_5 = arith.constant 0 : index
    %6 = vector.load %arg5[%c0_4, %c0_5] : memref<16x128xf32, #tpu.memory_space<vmem>>, vector<16x128xf32>
    tpu.vector_store %arg5[%c0_4, %c0_5], %5 {strides = array<i32>} : memref<16x128xf32, #tpu.memory_space<vmem>>, vector<16x128xf32>,
    %c1_i32 = arith.constant 1 : i32
    %7 = arith.cmpi eq, %arg1, %c1_i32 : i32
    %8 = arith.extui %7 : i1 to i32
    %c0_i32_6 = arith.constant 0 : i32
    %9 = arith.cmpi ne, %8, %c0_i32_6 : i32
    scf.if %9 {
      %16 = tpu.iota {dimensions = array<i32: 1>} : vector<1x128xi32>
      %c128_i32 = arith.constant 128 : i32
      %17 = arith.muli %arg1, %c128_i32 : i32
      %18 = vector.broadcast %17 : i32 to vector<1x128xi32>
      %19 = arith.addi %16, %18 : vector<1x128xi32>
      %c200_i32 = arith.constant 200 : i32
      %20 = vector.broadcast %c200_i32 : i32 to vector<1x128xi32>
      %21 = arith.cmpi slt, %19, %20 : vector<1x128xi32>
      %cst_11 = arith.constant 0xFF800000 : f32
      %22 = vector.shape_cast %21 : vector<1x128xi1> to vector<1x128xi1>
      %23 = vector.broadcast %22 : vector<1x128xi1> to vector<16x128xi1>
      %24 = vector.broadcast %cst_11 : f32 to vector<16x128xf32>
      %25 = arith.select %23, %5, %24 : vector<16x128xi1>, vector<16x128xf32>
      %c0_12 = arith.constant 0 : index
      %c0_13 = arith.constant 0 : index
      %26 = vector.load %arg8[%c0_12, %c0_13] : memref<16x1xf32, #tpu.memory_space<vmem>>, vector<16x1xf32>
      %cst_14 = arith.constant dense<0xFF800000> : vector<16xf32>
      %27 = vector.multi_reduction <maximumf>, %25, %cst_14 [1] : vector<16x128xf32> to vector<16xf32>
      %28 = vector.shape_cast %27 : vector<16xf32> to vector<16x1xf32>
      %29 = arith.maximumf %26, %28 : vector<16x1xf32>
      %30 = arith.subf %26, %29 : vector<16x1xf32>
      %31 = math.exp %30 : vector<16x1xf32>
      %32 = vector.broadcast %29 : vector<16x1xf32> to vector<16x128xf32>
      %33 = arith.subf %25, %32 : vector<16x128xf32>
      %34 = math.exp %33 : vector<16x128xf32>
      %c0_15 = arith.constant 0 : index
      %c0_16 = arith.constant 0 : index
      %35 = vector.load %arg9[%c0_15, %c0_16] : memref<16x1xf32, #tpu.memory_space<vmem>>, vector<16x1xf32>
      %36 = arith.mulf %31, %35 : vector<16x1xf32>
      %cst_17 = arith.constant dense<0.000000e+00> : vector<16xf32>
      %37 = vector.multi_reduction <add>, %34, %cst_17 [1] : vector<16x128xf32> to vector<16xf32>
      %38 = vector.shape_cast %37 : vector<16xf32> to vector<16x1xf32>
      %39 = arith.addf %36, %38 : vector<16x1xf32>
      %c0_18 = arith.constant 0 : index
      %c0_19 = arith.constant 0 : index
      %40 = vector.load %arg9[%c0_18, %c0_19] : memref<16x1xf32, #tpu.memory_space<vmem>>, vector<16x1xf32>
      tpu.vector_store %arg9[%c0_18, %c0_19], %39 {strides = array<i32>} : memref<16x1xf32, #tpu.memory_space<vmem>>, vector<16x1xf32>,
      %c0_20 = arith.constant 0 : index
      %c0_21 = arith.constant 0 : index
      %41 = vector.load %arg8[%c0_20, %c0_21] : memref<16x1xf32, #tpu.memory_space<vmem>>, vector<16x1xf32>
      tpu.vector_store %arg8[%c0_20, %c0_21], %29 {strides = array<i32>} : memref<16x1xf32, #tpu.memory_space<vmem>>, vector<16x1xf32>,
    } else {
    }
    %c1_i32_7 = arith.constant 1 : i32
    %10 = arith.cmpi slt, %arg1, %c1_i32_7 : i32
    %11 = arith.extui %10 : i1 to i32
    %c0_i32_8 = arith.constant 0 : i32
    %12 = arith.cmpi ne, %11, %c0_i32_8 : i32
    scf.if %12 {
      %c0_11 = arith.constant 0 : index
      %c0_12 = arith.constant 0 : index
      %16 = vector.load %arg8[%c0_11, %c0_12] : memref<16x1xf32, #tpu.memory_space<vmem>>, vector<16x1xf32>
      %cst_13 = arith.constant dense<0xFF800000> : vector<16xf32>
      %17 = vector.multi_reduction <maximumf>, %5, %cst_13 [1] : vector<16x128xf32> to vector<16xf32>
      %18 = vector.shape_cast %17 : vector<16xf32> to vector<16x1xf32>
      %19 = arith.maximumf %16, %18 : vector<16x1xf32>
      %20 = arith.subf %16, %19 : vector<16x1xf32>
      %21 = math.exp %20 : vector<16x1xf32>
      %22 = vector.broadcast %19 : vector<16x1xf32> to vector<16x128xf32>
      %23 = arith.subf %5, %22 : vector<16x128xf32>
      %24 = math.exp %23 : vector<16x128xf32>
      %c0_14 = arith.constant 0 : index
      %c0_15 = arith.constant 0 : index
      %25 = vector.load %arg9[%c0_14, %c0_15] : memref<16x1xf32, #tpu.memory_space<vmem>>, vector<16x1xf32>
      %26 = arith.mulf %21, %25 : vector<16x1xf32>
      %cst_16 = arith.constant dense<0.000000e+00> : vector<16xf32>
      %27 = vector.multi_reduction <add>, %24, %cst_16 [1] : vector<16x128xf32> to vector<16xf32>
      %28 = vector.shape_cast %27 : vector<16xf32> to vector<16x1xf32>
      %29 = arith.addf %26, %28 : vector<16x1xf32>
      %c0_17 = arith.constant 0 : index
      %c0_18 = arith.constant 0 : index
      %30 = vector.load %arg9[%c0_17, %c0_18] : memref<16x1xf32, #tpu.memory_space<vmem>>, vector<16x1xf32>
      tpu.vector_store %arg9[%c0_17, %c0_18], %29 {strides = array<i32>} : memref<16x1xf32, #tpu.memory_space<vmem>>, vector<16x1xf32>,
      %c0_19 = arith.constant 0 : index
      %c0_20 = arith.constant 0 : index
      %31 = vector.load %arg8[%c0_19, %c0_20] : memref<16x1xf32, #tpu.memory_space<vmem>>, vector<16x1xf32>
      tpu.vector_store %arg8[%c0_19, %c0_20], %19 {strides = array<i32>} : memref<16x1xf32, #tpu.memory_space<vmem>>, vector<16x1xf32>,
    } else {
    }
    %c1_i32_9 = arith.constant 1 : i32
    %13 = arith.cmpi eq, %arg1, %c1_i32_9 : i32
    %14 = arith.extui %13 : i1 to i32
    %c0_i32_10 = arith.constant 0 : i32
    %15 = arith.cmpi ne, %14, %c0_i32_10 : i32
    scf.if %15 {
      %c0_11 = arith.constant 0 : index
      %c0_12 = arith.constant 0 : index
      %16 = vector.load %arg8[%c0_11, %c0_12] : memref<16x1xf32, #tpu.memory_space<vmem>>, vector<16x1xf32>
      %c0_13 = arith.constant 0 : index
      %c0_14 = arith.constant 0 : index
      %17 = vector.load %arg9[%c0_13, %c0_14] : memref<16x1xf32, #tpu.memory_space<vmem>>, vector<16x1xf32>
      %18 = math.log %17 : vector<16x1xf32>
      %19 = arith.addf %16, %18 : vector<16x1xf32>
      %c0_15 = arith.constant 0 : index
      %c0_16 = arith.constant 0 : index
      %20 = vector.load %arg10[%c0_15, %c0_16] : memref<16x1xf32, #tpu.memory_space<vmem>>, vector<16x1xf32>
      %21 = arith.subf %19, %20 : vector<16x1xf32>
      %22 = tpu.iota {dimensions = array<i32: 0>} : vector<16x1xi32>
      %c16_i32 = arith.constant 16 : i32
      %23 = arith.muli %arg0, %c16_i32 : i32
      %24 = vector.broadcast %23 : i32 to vector<16x1xi32>
      %25 = arith.addi %22, %24 : vector<16x1xi32>
      %c10_i32 = arith.constant 10 : i32
      %26 = vector.broadcast %c10_i32 : i32 to vector<16x1xi32>
      %27 = arith.cmpi slt, %25, %26 : vector<16x1xi32>
      %cst_17 = arith.constant 0.000000e+00 : f32
      %28 = vector.broadcast %cst_17 : f32 to vector<16x1xf32>
      %29 = arith.select %27, %21, %28 : vector<16x1xi1>, vector<16x1xf32>
      %c0_18 = arith.constant 0 : index
      %c0_19 = arith.constant 0 : index
      %30 = vector.load %arg6[%c0_18, %c0_19] : memref<16x1xf32, #tpu.memory_space<vmem>>, vector<16x1xf32>
      tpu.vector_store %arg6[%c0_18, %c0_19], %29 {strides = array<i32>} : memref<16x1xf32, #tpu.memory_space<vmem>>, vector<16x1xf32>,
    } else {
    }
    return
  }
  func.func @transform_0(%arg0: i32, %arg1: i32) -> (i32, i32) {
    %c0_i32 = arith.constant 0 : i32
    %c0_i32_0 = arith.constant 0 : i32
    return %arg0, %c0_i32 : i32, i32
  }
  func.func @transform_1(%arg0: i32, %arg1: i32) -> (i32, i32) {
    %c0_i32 = arith.constant 0 : i32
    %c0_i32_0 = arith.constant 0 : i32
    return %arg1, %c0_i32 : i32, i32
  }
  func.func @transform_2(%arg0: i32, %arg1: i32) -> (i32, i32) {
    %c0_i32 = arith.constant 0 : i32
    %c0_i32_0 = arith.constant 0 : i32
    return %arg0, %c0_i32 : i32, i32
  }
  func.func @transform_3(%arg0: i32, %arg1: i32) -> (i32, i32) {
    %c0_i32 = arith.constant 0 : i32
    return %arg0, %arg1 : i32, i32
  }
  func.func @transform_4(%arg0: i32, %arg1: i32) -> (i32, i32) {
    %c0_i32 = arith.constant 0 : i32
    %c0_i32_0 = arith.constant 0 : i32
    return %arg0, %c0_i32 : i32, i32
  }
}

</mosaic_0001>

<bundles_post_ra>
// kernel: tpu_custom_call.1
= control target key start
LH: loop header
LB: loop body
LE: loop exit
PB: predicated region body
PF: predicated region fallthrough
CT: control target
= control target key end

     0   :  { %10 = vsyncpa [#allocation7], 0  ;;  %s1276_s0 = inlined_call_operand.vmem [shape: f32[16,64], index: 0, kind: input, shape index: {}]   ;;  %s1277_s1 = inlined_call_operand.vmem [shape: f32[256,64], index: 1, kind: input, shape index: {}]   ;;  %s1278_s2 = inlined_call_operand.vmem [shape: f32[16,64], index: 2, kind: input, shape index: {}]   ;;  %s1279_s3 = inlined_call_operand.hbm [shape: f32[16,256], index: 3, kind: output, shape index: {0}]   ;;  %s1280_s4 = inlined_call_operand.vmem [shape: f32[16,1], index: 4, kind: output, shape index: {1}]  }
   0x1   :  { %12 = vsyncpa [#allocation7 + $0x1], 0  ;;  %s1044_s15 = smov 0   ;;  %s1046_s16 = smov 0  }
   0x2   :  { %s1048_s17 = smov 0   ;;  %s1050_s18 = smov 0  }
   0x3   :  { %s1052_s19 = smov 0   ;;  %s1054_s20 = smov 0  }
   0x4 LB: > { %s751_s21 = sadd.s32 4294967295, %s1009_s20   ;;  %s752_s22 = sadd.s32 4294967294, %s1009_s20   ;;  %s1009_s20 = sphi %s1054_s20, %s18_s20   ;;  %s1005_s19 = sphi %s1052_s19, %s1287_s19   ;;  %s1001_s18 = sphi %s1050_s18, %s1286_s18   ;;  %s997_s17 = sphi %s1048_s17, %s1285_s17   ;;  %s993_s16 = sphi %s1046_s16, %s1284_s16   ;;  %s989_s15 = sphi %s1044_s15, %s1283_s15  }
   0x5   : > { %s27_s23 = sadd.s32 1, %s1005_s19  ;;  %s117_s24 = sadd.s32 1, %s997_s17 }
   0x6   : > { %p28_p0 = scmp.ge.s32.totalorder %s27_s23, 2  ;;  %p127_p1 = scmp.ne.s32.totalorder %s997_s17, %s993_s16 }
   0x7   : > { %p128_p2 = scmp.eq.s32.totalorder %s751_s21, 1  ;;  %p133_p3 = scmp.ne.s32.totalorder %s993_s16, %s989_s15 }
   0x8   : > { %s1289_s23 = smov (%p28_p0, %s27_s23), 0  ;;  %p134_p5 = scmp.eq.s32.totalorder %s752_s22, 1 }
   0x9   : > { %p1084_p4 = por %p128_p2, %p127_p1  ;;  %s113_s26 = ssub.s32 %s1005_s19, %s1289_s23 }
   0xa   : > { %p757_p6 = scmp.ge.s32.totalorder %s1009_s20, 1  ;;  %p115_p7 = scmp.eq.s32.totalorder %s113_s26, 0 }
   0xb   : > { %p1091_p8 = por %p134_p5, %p133_p3  ;;  %p205_p9 = scmp.lt.s32.totalorder %s1009_s20, 3 }
   0xc   : > { %s1097_s28 = scalar_select %p115_p7, %s997_s17, %s117_s24  }
   0xd   : > { %p206_p10 = pnand %p757_p6, %p205_p9 }
   0xe   : > { %s236_s29 = sand.u32 (!%p206_p10), 1, %s993_s16   ;;  %s759_s30 = sshll.u32 (!%p206_p10), %s1001_s18, 4 }
   0xf   : > { %209 = sbr.rel (%p206_p10) target bundleno = 1517 (0x5ed), region = 32  ;;  %s758_s5 = sshll.u32 (!%p206_p10), %s236_s29, 4 }
  0x10   : > { %p253_p11 = scmp.lt.s32.totalorder (!%p206_p10), %s759_s30, 31  ;;  %s1108_s10 = scalar_lea.vmem (!%p206_p10), [#allocation6], %s758_s5 }
  0x11   : > { %p761_p12 = scmp.ne.s32.totalorder (!%p206_p10), %s1001_s18, 0 }
  0x14   : > { %s1291_s30 = smov (!%p253_p11, %s759_s30), 31  ;;  %274 = sbr.rel (%p761_p12) target bundleno = 333 (0x14d), region = 36 }
  0x15   : > { %s760_s6 = sshll.u32 %s1291_s30, 3 }
  0x16   : > { %s1106_s9 = scalar_lea.vmem %s1277_s1, %s760_s6 }
  0x19   : > { %v275_v0 = vld [vmem:[%s1276_s0] sm:$0xff]  ;;  %vm279_vm0 = vcmask 523264   ;;  %v276_v1 = vld [vmem:[%s1276_s0 + $0x8] sm:$0xff]  ;;  %vm306_vm1 = vcmask 7168   ;;  %v1011_v6 = vmov -inf   ;;  %v1012_v7 = vmov 0.0  }
  0x1a   : > { %v277_v2 = vmul.f32 %v275_v0, %v275_v0  ;;  %v278_v3 = vmul.f32 %v276_v1, %v276_v1  ;;  %309 = vst.msk [vmem:[#allocation3] sm:$0xff] %vm306_vm1, %v1011_v6  ;;  %310 = vst.msk [vmem:[#allocation3 + $0x8] sm:$0xff] %vm306_vm1, %v1011_v6  ;;  %v296_v14 = vld [vmem:[%s1278_s2] sm:$0xff]  ;;  %v297_v19 = vld [vmem:[%s1278_s2 + $0x8] sm:$0xff] }
  0x1b   : > { %311 = vst.msk [vmem:[#allocation4] sm:$0xff] %vm306_vm1, %v1012_v7  ;;  %312 = vst.msk [vmem:[#allocation4 + $0x8] sm:$0xff] %vm306_vm1, %v1012_v7 }
  0x1c   : > { %v280_v4 = vsel %vm279_vm0, %v277_v2, 0.0  ;;  %v283_v5 = vsel %vm279_vm0, %v278_v3, 0.0 }
  0x1d   : > { %281 = vadd.xlane.f32.xlu0 %v280_v4 }
  0x21   : > { %284 = vadd.xlane.f32.xlu0 %v283_v5 }
  0xa6   : > { %v282_v8 = vpop.xlane.xlu0 %281 }
  0xa7   : > { %v286_v9 = vmax.f32 %v282_v8, 1e-24 }
  0xa9   : > { %905 = vrsqrt.f32 %v286_v9 }
  0xaa   : > { %v285_v10 = vpop.xlane.xlu0 %284 }
  0xab   : > { %v287_v11 = vmax.f32 %v285_v10, 1e-24 }
  0xad   : > { %907 = vrsqrt.f32 %v287_v11 }
  0xb6   : > { %v906_v12 = vpop.eup %905 }
  0xb7   : > { %v290_v13 = vmul.f32 20.0, %v906_v12 }
  0xb9   : > { %v292_v15 = vmul.f32 %v290_v13, %v275_v0 }
  0xba   : > { %v908_v16 = vpop.eup %907 }
  0xbb   : > { %v291_v17 = vmul.f32 20.0, %v908_v16  ;;  %v298_v18 = vmul.f32 %v296_v14, %v292_v15  ;;  %294 = vst.msk [vmem:[#allocation2] sm:$0xff] %vm279_vm0, %v292_v15 }
  0xbd   : > { %v300_v20 = vsel %vm279_vm0, %v298_v18, 0.0  ;;  %v293_v21 = vmul.f32 %v291_v17, %v276_v1 }
  0xbe   : > { %301 = vadd.xlane.f32.xlu1 %v300_v20 }
  0xbf   : > { %v299_v22 = vmul.f32 %v297_v19, %v293_v21  ;;  %295 = vst.msk [vmem:[#allocation2 + $0x8] sm:$0xff] %vm279_vm0, %v293_v21 }
  0xc1   : > { %v303_v23 = vsel %vm279_vm0, %v299_v22, 0.0 }
  0xc2   : > { %304 = vadd.xlane.f32.xlu1 %v303_v23 }
 0x147   : > { %v302_v24 = vpop.xlane.xlu1 %301 }
 0x148   : > { %307 = vst.msk [vmem:[#allocation5] sm:$0xff] %vm306_vm1, %v302_v24 }
 0x14b   : > { %v305_v25 = vpop.xlane.xlu1 %304 }
 0x14c   : > { %308 = vst.msk [vmem:[#allocation5 + $0x8] sm:$0xff] %vm306_vm1, %v305_v25 }
 0x14d PF: > { %v330_v26 = vld [vmem:[%s1106_s9 + $0x78] sm:$0xff]  ;;  %vm331_vm2 = vcmask 523264   ;;  %v329_v27 = vld [vmem:[%s1106_s9 + $0x70] sm:$0xff]  ;;  %v328_v28 = vld [vmem:[%s1106_s9 + $0x68] sm:$0xff]  ;;  %p780_p13 = scmp.ne.s32.totalorder %s1001_s18, 1 }
 0x14e   : > { %808 = vmatprep.subr.msk.mxu0 %vm331_vm2, %v330_v26  ;;  %v313_v29 = vld [vmem:[#allocation2] sm:$0xff]  ;;  %v326_v31 = vld [vmem:[%s1106_s9 + $0x58] sm:$0xff]  ;;  %v325_v32 = vld [vmem:[%s1106_s9 + $0x50] sm:$0xff]  ;;  %s781_s30 = sshll.u32 (!%p780_p13), %s1001_s18, 7 }
 0x14f   : > { %809 = vmatpush3.xpose.msk.msra.mxu0 %vm331_vm2, %v330_v26  ;;  %840 = vmatprep.mubr.msk.f32.mxu0 %vm331_vm2, %v313_v29  ;;  %v327_v30 = vld [vmem:[%s1106_s9 + $0x60] sm:$0xff]  ;;  %v324_v33 = vld [vmem:[%s1106_s9 + $0x48] sm:$0xff]  ;;  %v322_v35 = vld [vmem:[%s1106_s9 + $0x38] sm:$0xff] }
 0x150   : > { %810 = vmatprep.subr.msk.mxu0 %vm331_vm2, %v329_v27  ;;  %v323_v34 = vld [vmem:[%s1106_s9 + $0x40] sm:$0xff]  ;;  %v321_v36 = vld [vmem:[%s1106_s9 + $0x30] sm:$0xff]  ;;  %v320_v37 = vld [vmem:[%s1106_s9 + $0x28] sm:$0xff] }
 0x151   : > { %v319_v38 = vld [vmem:[%s1106_s9 + $0x20] sm:$0xff]  ;;  %v318_v39 = vld [vmem:[%s1106_s9 + $0x18] sm:$0xff]  ;;  %v317_v40 = vld [vmem:[%s1106_s9 + $0x10] sm:$0xff] }
 0x152   : > { %v316_v41 = vld [vmem:[%s1106_s9 + $0x8] sm:$0xff]  ;;  %v315_v42 = vld [vmem:[%s1106_s9] sm:$0xff] }
 0x153   : > { %811 = vmatpush3.xpose.msk.msra.mxu0 %vm331_vm2, %v329_v27  ;;  %v314_v43 = vld [vmem:[#allocation2 + $0x8] sm:$0xff] }
 0x154   : > { %812 = vmatprep.subr.msk.mxu0 %vm331_vm2, %v328_v28 }
 0x157   : > { %813 = vmatpush3.xpose.msk.msra.mxu0 %vm331_vm2, %v328_v28 }
 0x158   : > { %814 = vmatprep.subr.msk.mxu0 %vm331_vm2, %v327_v30 }
 0x15b   : > { %815 = vmatpush3.xpose.msk.msra.mxu0 %vm331_vm2, %v327_v30 }
 0x15c   : > { %816 = vmatprep.subr.msk.mxu0 %vm331_vm2, %v326_v31 }
 0x15f   : > { %817 = vmatpush3.xpose.msk.msra.mxu0 %vm331_vm2, %v326_v31 }
 0x160   : > { %818 = vmatprep.subr.msk.mxu0 %vm331_vm2, %v325_v32 }
 0x163   : > { %819 = vmatpush3.xpose.msk.msra.mxu0 %vm331_vm2, %v325_v32 }
 0x164   : > { %820 = vmatprep.subr.msk.mxu0 %vm331_vm2, %v324_v33 }
 0x167   : > { %821 = vmatpush3.xpose.msk.msra.mxu0 %vm331_vm2, %v324_v33 }
 0x168   : > { %822 = vmatprep.subr.msk.mxu0 %vm331_vm2, %v323_v34 }
 0x16b   : > { %823 = vmatpush3.xpose.msk.msra.mxu0 %vm331_vm2, %v323_v34 }
 0x16c   : > { %824 = vmatprep.subr.msk.mxu0 %vm331_vm2, %v322_v35 }
 0x16f   : > { %825 = vmatpush3.xpose.msk.msra.mxu0 %vm331_vm2, %v322_v35 }
 0x170   : > { %826 = vmatprep.subr.msk.mxu0 %vm331_vm2, %v321_v36 }
 0x173   : > { %827 = vmatpush3.xpose.msk.msra.mxu0 %vm331_vm2, %v321_v36 }
 0x174   : > { %828 = vmatprep.subr.msk.mxu0 %vm331_vm2, %v320_v37 }
 0x177   : > { %829 = vmatpush3.xpose.msk.msra.mxu0 %vm331_vm2, %v320_v37 }
 0x178   : > { %830 = vmatprep.subr.msk.mxu0 %vm331_vm2, %v319_v38 }
 0x17b   : > { %831 = vmatpush3.xpose.msk.msra.mxu0 %vm331_vm2, %v319_v38 }
 0x17c   : > { %832 = vmatprep.subr.msk.mxu0 %vm331_vm2, %v318_v39 }
 0x17f   : > { %833 = vmatpush3.xpose.msk.msra.mxu0 %vm331_vm2, %v318_v39 }
 0x180   : > { %834 = vmatprep.subr.msk.mxu0 %vm331_vm2, %v317_v40 }
 0x183   : > { %835 = vmatpush3.xpose.msk.msra.mxu0 %vm331_vm2, %v317_v40 }
 0x184   : > { %836 = vmatprep.subr.msk.mxu0 %vm331_vm2, %v316_v41 }
 0x187   : > { %837 = vmatpush3.xpose.msk.msra.mxu0 %vm331_vm2, %v316_v41 }
 0x188   : > { %838 = vmatprep.subr.msk.mxu0 %vm331_vm2, %v315_v42 }
 0x18b   : > { %839 = vmatpush3.xpose.msk.msra.mxu0 %vm331_vm2, %v315_v42 }
 0x18e   : > { %841 = vmatmul.mubr.msk.f32.vlgmr.msra.gmra.mxu0 %vm331_vm2, %v314_v43 }
 0x24d   : > { %466 = sbr.rel (%p780_p13) target bundleno = 1029 (0x405), region = 40 }
 0x24e   : > { %v1185_v44 = vpop.f32.mrf.mxu0 }
 0x24f   : > { %462 = vst [vmem:[%s1108_s10 + $0x8] sm:$0xff] %v1185_v44 }
 0x250   : > { %v1189_v45 = vpop.f32.mrf.mxu0 }
 0x251   : > { %461 = vst [vmem:[%s1108_s10] sm:$0xff] %v1189_v45 }
 0x252   : > { %v467_v46 = vlaneseq  ;;  %v470_v47 = vstv %s781_s30  ;;  %v1013_v52 = vmov 0   ;;  %v477_v53 = vld [vmem:[#allocation3] sm:$0xff]  ;;  %vm517_vm4 = vcmask 7168   ;;  %v478_v56 = vld [vmem:[#allocation3 + $0x8] sm:$0xff]  ;;  %v507_v8 = vld [vmem:[#allocation4] sm:$0xff] }
 0x253   : > { %909 = vset.pattern.permute.xlu1 %v1013_v52  ;;  %910 = vset.pattern.permute.xlu0 %v1013_v52  ;;  %v508_v12 = vld [vmem:[#allocation4 + $0x8] sm:$0xff] }
 0x254   : > { %v468_v48 = vand.u32 127, %v467_v46 }
 0x256   : > { %v471_v49 = vadd.s32 %v470_v47, %v468_v48 }
 0x258   : > { %vm472_vm3 = vcmp.lt.s32.totalorder %v471_v49, 200 }
 0x259   : > { %v475_v50 = vsel %vm472_vm3, %v1189_v45, -inf  ;;  %v476_v51 = vsel %vm472_vm3, %v1185_v44, -inf }
 0x25a   : > { %479 = vmax.xlane.f32.xlu0 %v475_v50 }
 0x25e   : > { %481 = vmax.xlane.f32.xlu0 %v476_v51 }
 0x2e3   : > { %v480_v54 = vpop.xlane.xlu0 %479 }
 0x2e4   : > { %v483_v55 = vmax.f32 %v477_v53, %v480_v54 }
 0x2e6   : > { %v485_v57 = vsub.f32 %v477_v53, %v483_v55  ;;  %520 = vst.msk [vmem:[#allocation3] sm:$0xff] %vm517_vm4, %v483_v55  ;;  %493 = vperm.xlu1 %909, %v483_v55  }
 0x2e7   : > { %v482_v58 = vpop.xlane.xlu0 %481 }
 0x2e8   : > { %v484_v59 = vmax.f32 %v478_v56, %v482_v58  ;;  %v487_v5 = vmul.f32 1.442695, %v485_v57 }
 0x2ea   : > { %v486_v60 = vsub.f32 %v478_v56, %v484_v59  ;;  %521 = vst.msk [vmem:[#allocation3 + $0x8] sm:$0xff] %vm517_vm4, %v484_v59  ;;  %498 = vperm.xlu1 %909, %v484_v59  }
 0x2ec   : > { %v489_v6 = vmul.f32 1.442695, %v486_v60 }
 0x361   : > { %v494_v61 = vpop.permute.xlu1 %493 }
 0x362   : > { %v501_v62 = vsub.f32 %v475_v50, %v494_v61 }
 0x364   : > { %v503_v63 = vmul.f32 1.442695, %v501_v62 }
 0x365   : > { %v499_v0 = vpop.permute.xlu1 %498 }
 0x366   : > { %911 = vpow2.f32 %v503_v63  ;;  %v502_v1 = vsub.f32 %v476_v51, %v499_v0 }
 0x368   : > { %v505_v2 = vmul.f32 1.442695, %v502_v1 }
 0x36a   : > { %913 = vpow2.f32 %v505_v2 }
 0x36b   : > { %915 = vpow2.f32 %v487_v5 }
 0x36c   : > { %917 = vpow2.f32 %v489_v6 }
 0x373   : > { %v912_v3 = vpop.eup %911 }
 0x374   : > { %511 = vadd.xlane.f32.xlu0 %v912_v3 }
 0x377   : > { %v914_v4 = vpop.eup %913 }
 0x378   : > { %513 = vadd.xlane.f32.xlu1 %v914_v4  ;;  %v916_v7 = vpop.eup %915 }
 0x379   : > { %v509_v9 = vmul.f32 %v916_v7, %v507_v8  ;;  %v918_v10 = vpop.eup %917 }
 0x37a   : > { %v510_v14 = vmul.f32 %v918_v10, %v508_v12 }
 0x3fd   : > { %v512_v11 = vpop.xlane.xlu0 %511 }
 0x3fe   : > { %v515_v13 = vadd.f32 %v512_v11, %v509_v9 }
 0x400   : > { %518 = vst.msk [vmem:[#allocation4] sm:$0xff] %vm517_vm4, %v515_v13 }
 0x401   : > { %v514_v15 = vpop.xlane.xlu1 %513 }
 0x402   : > { %v516_v16 = vadd.f32 %v514_v15, %v510_v14 }
 0x404   : > { %519 = vst.msk [vmem:[#allocation4 + $0x8] sm:$0xff] %vm517_vm4, %v516_v16 }
 0x405 PF: > { %p782_p0 = scmp.ge.s32.totalorder %s1001_s18, 1 }
 0x407   : > { %525 = sbr.rel (%p782_p0) target bundleno = 1463 (0x5b7), region = 44 }
 0x40c   : > { %528 = vmax.xlane.f32.xlu0 %v1189_v45  ;;  %v1014_v17 = vmov 0   ;;  %v526_v18 = vld [vmem:[#allocation3] sm:$0xff]  ;;  %vm566_vm5 = vcmask 7168   ;;  %v527_v21 = vld [vmem:[#allocation3 + $0x8] sm:$0xff]  ;;  %v556_v37 = vld [vmem:[#allocation4] sm:$0xff] }
 0x40d   : > { %919 = vset.pattern.permute.xlu1 %v1014_v17  ;;  %920 = vset.pattern.permute.xlu0 %v1014_v17  ;;  %v557_v41 = vld [vmem:[#allocation4 + $0x8] sm:$0xff] }
 0x410   : > { %530 = vmax.xlane.f32.xlu0 %v1185_v44 }
 0x495   : > { %v529_v19 = vpop.xlane.xlu0 %528 }
 0x496   : > { %v532_v20 = vmax.f32 %v526_v18, %v529_v19 }
 0x498   : > { %v534_v22 = vsub.f32 %v526_v18, %v532_v20  ;;  %569 = vst.msk [vmem:[#allocation3] sm:$0xff] %vm566_vm5, %v532_v20  ;;  %542 = vperm.xlu1 %919, %v532_v20  }
 0x499   : > { %v531_v23 = vpop.xlane.xlu0 %530 }
 0x49a   : > { %v533_v24 = vmax.f32 %v527_v21, %v531_v23  ;;  %v536_v34 = vmul.f32 1.442695, %v534_v22 }
 0x49c   : > { %v535_v25 = vsub.f32 %v527_v21, %v533_v24  ;;  %570 = vst.msk [vmem:[#allocation3 + $0x8] sm:$0xff] %vm566_vm5, %v533_v24  ;;  %547 = vperm.xlu1 %919, %v533_v24  }
 0x49e   : > { %v538_v35 = vmul.f32 1.442695, %v535_v25 }
 0x513   : > { %v543_v26 = vpop.permute.xlu1 %542 }
 0x514   : > { %v550_v27 = vsub.f32 %v1189_v45, %v543_v26 }
 0x516   : > { %v552_v28 = vmul.f32 1.442695, %v550_v27 }
 0x517   : > { %v548_v29 = vpop.permute.xlu1 %547 }
 0x518   : > { %921 = vpow2.f32 %v552_v28  ;;  %v551_v30 = vsub.f32 %v1185_v44, %v548_v29 }
 0x51a   : > { %v554_v31 = vmul.f32 1.442695, %v551_v30 }
 0x51c   : > { %923 = vpow2.f32 %v554_v31 }
 0x51d   : > { %925 = vpow2.f32 %v536_v34 }
 0x51e   : > { %927 = vpow2.f32 %v538_v35 }
 0x525   : > { %v922_v32 = vpop.eup %921 }
 0x526   : > { %560 = vadd.xlane.f32.xlu0 %v922_v32 }
 0x529   : > { %v924_v33 = vpop.eup %923 }
 0x52a   : > { %562 = vadd.xlane.f32.xlu1 %v924_v33  ;;  %v926_v36 = vpop.eup %925 }
 0x52b   : > { %v558_v38 = vmul.f32 %v926_v36, %v556_v37  ;;  %v928_v39 = vpop.eup %927 }
 0x52c   : > { %v559_v43 = vmul.f32 %v928_v39, %v557_v41 }
 0x5af   : > { %v561_v40 = vpop.xlane.xlu0 %560 }
 0x5b0   : > { %v564_v42 = vadd.f32 %v561_v40, %v558_v38 }
 0x5b2   : > { %567 = vst.msk [vmem:[#allocation4] sm:$0xff] %vm566_vm5, %v564_v42 }
 0x5b3   : > { %v563_v44 = vpop.xlane.xlu1 %562 }
 0x5b4   : > { %v565_v45 = vadd.f32 %v563_v44, %v559_v43 }
 0x5b6   : > { %568 = vst.msk [vmem:[#allocation4 + $0x8] sm:$0xff] %vm566_vm5, %v565_v45 }
 0x5b7 PF: > { %573 = sbr.rel (%p780_p13) target bundleno = 1492 (0x5d4), region = 48 }
 0x5bc   : > { %v576_v46 = vld [vmem:[#allocation4] sm:$0xff]  ;;  %v588_v48 = vlaneseq  ;;  %v574_v51 = vld [vmem:[#allocation3] sm:$0xff]  ;;  %v575_v54 = vld [vmem:[#allocation3 + $0x8] sm:$0xff]  ;;  %vm599_vm6 = vcmask 7168  }
 0x5bd   : > { %929 = vlog2.f32 %v576_v46  ;;  %v577_v47 = vld [vmem:[#allocation4 + $0x8] sm:$0xff]  ;;  %v584_v56 = vld [vmem:[#allocation5] sm:$0xff]  ;;  %v585_v59 = vld [vmem:[#allocation5 + $0x8] sm:$0xff] }
 0x5be   : > { %931 = vlog2.f32 %v577_v47  ;;  %v589_v49 = vshrl.u32 %v588_v48, 7 }
 0x5c0   : > { %v590_v55 = vadd.s32 8, %v589_v49 }
 0x5c2   : > { %vm596_vm7 = vcmp.lt.s32.totalorder %v590_v55, 10 }
 0x5ca   : > { %v930_v50 = vpop.eup %929 }
 0x5cb   : > { %v932_v52 = vpop.eup %931  ;;  %v579_v53 = vmul.f32 0.6931472, %v930_v50 }
 0x5cc   : > { %v581_v57 = vmul.f32 0.6931472, %v932_v52 }
 0x5cd   : > { %v582_v58 = vadd.f32 %v579_v53, %v574_v51 }
 0x5ce   : > { %v583_v60 = vadd.f32 %v581_v57, %v575_v54 }
 0x5cf   : > { %v586_v61 = vsub.f32 %v582_v58, %v584_v56 }
 0x5d0   : > { %v587_v62 = vsub.f32 %v583_v60, %v585_v59 }
 0x5d1   : > { %600 = vst.msk [vmem:[%s1280_s4] sm:$0xff] %vm599_vm6, %v586_v61 }
 0x5d2   : > { %v598_v63 = vsel %vm596_vm7, %v587_v62, 0.0 }
 0x5d3   : > { %601 = vst.msk [vmem:[%s1280_s4 + $0x8] sm:$0xff] %vm599_vm6, %v598_v63 }
 0x5d4 PF: > { %s785_s9 = sshll.u32 %s1001_s18, 7  ;;  %s623_s14 = sshll.u32 %s1108_s10, 4  ;;  %s1227_s14 = int_to_ptr.vmem [resolvable:$true] %s623_s14 }
 0x5d5   : > { %s1224_s13 = scalar_lea.hbm %s1279_s3, %s785_s9  ;;  %s1231_s21 = scalar_lea.sflag [#allocation7], %s236_s29 }
 0x5d6   : > { %s933_s22 = scalar_lea.vmem %s1227_s14, 256  ;;  %s1015_s18 = smov [#allocation6]  }
 0x5d7   : > { %p934_p1 = scmp.ne.s32.totalorder %s1227_s14, %s933_s22  ;;  %s937_s24 = sshll.u32 %s1015_s18, 4  ;;  %s938_s24 = int_to_ptr.vmem [resolvable:$false] %s937_s24 }
 0x5d8   : > { %s939_s26 = scalar_lea.vmem %s938_s24, 512  ;;  %p940_p5 = scmp.lt.s32.totalorder %s1227_s14, %s938_s24 }
 0x5d9   : > { %p935_p2 = pnand %p934_p1, %p1084_p4  ;;  %p941_p6 = scmp.lt.s32.totalorder %s939_s26, %s933_s22 }
 0x5db   : > { %p936_p3 = pneg %p935_p2  ;;  %p942_p7 = por %p941_p6, %p940_p5 }
 0x5dd   : > { %p943_p9 = pnand %p942_p7, %p936_p3 }
 0x5df   : > { %946 = shalt.err (!%p943_p9)
}
 0x5e0   : > { %s947_s29 = scalar_lea.hbm %s1224_s13, 256  ;;  %s951_s5 = scalar_lea.hbm %s1279_s3, 512 }
 0x5e1   : > { %p948_p10 = scmp.ne.s32.totalorder %s1224_s13, %s947_s29  ;;  %p952_p13 = scmp.lt.s32.totalorder %s1224_s13, %s1279_s3 }
 0x5e2   : > { %p953_p0 = scmp.lt.s32.totalorder %s951_s5, %s947_s29 }
 0x5e3   : > { %p949_p11 = pnand %p948_p10, %p1084_p4 }
 0x5e4   : > { %p954_p1 = por %p953_p0, %p952_p13 }
 0x5e5   : > { %p950_p12 = pneg %p949_p11 }
 0x5e7   : > { %p955_p2 = pnand %p954_p1, %p950_p12 }
 0x5e9   : > { %958 = shalt.err (!%p955_p2)
}
 0x5ea   : > { %s1016_s8 = smov 128   ;;  %s1017_s9 = smov 256  }
 0x5eb   : > { %s1018_s11 = smov 8  }
 0x5ec   : > { %843 = dma.vmem_to_hbm [thread:$0]  (%p1084_p4), %s1227_s14, 256, %s1224_s13, %s1231_s21, %s1016_s8, %s1017_s9, %s1018_s11  }
 0x5ed PF: > { %p849_p3 = scmp.ge.s32.totalorder %s1009_s20, 2  ;;  %s650_s12 = sand.u32 1, %s989_s15  }
 0x5ee   : > { %s651_s22 = scalar_lea.sflag [#allocation7], %s650_s12 }
 0x5ef   : > { %p846_p5 = pnand %p849_p3, %p1091_p8 }
 0x5f1   : > { %p847_p6 = pneg %p846_p5 }
 0x5f3   : > { %984 = dma.done.wait (%p847_p6), %s651_s22, 256  }
 0x5f4   : > { %986 = vsyncadd (%p847_p6), %s651_s22, 4294967040  ;;  %s18_s20 = sadd.s32 1, %s1009_s20   ;;  %s1283_s15 = smov %s993_s16 }
 0x5f5   : > { %p15_p7 = scmp.ge.s32.totalorder %s18_s20, 4   ;;  %s1284_s16 = smov %s997_s17 }
 0x5f6   : > { %s1285_s17 = smov %s1097_s28  ;;  %s1286_s18 = smov %s1005_s19 }
 0x5f7   : > { %s1287_s19 = smov %s1289_s23  ;;  %17 = sbr.rel (!%p15_p7) target bundleno = 4 (0x4), region = 101 }
 0x5fc   :  { %656 = vsyncpa [#allocation7], 1 }
 0x5fd   :  { %658 = vsyncpa [#allocation7 + $0x1], 1 }

</bundles_post_ra>
